<compile_context>
chip_gen: v5e
topology: v5e:2x2
jax: 0.10.0
libtpu: 0.0.40
codegen_flags: <defaults>
</compile_context>

<pallas_src>
import numpy as np
import jax
import jax.numpy as jnp
from jax.experimental import pallas as pl
from jax.experimental.pallas import tpu as pltpu


# ----------------------------------------------------------------------------
# Synthetic smpl_x metadata (deterministic, in-script): a small structured
# triangle mesh standing in for the upsampled SMPL-X surface + hand masks.
# ----------------------------------------------------------------------------
class _SMPLX:
    def __init__(self, gy=8, gx=12):
        self.grid = (gy, gx)
        self.vertex_num_upsampled = gy * gx
        faces = []
        for y in range(gy - 1):
            for x in range(gx - 1):
                v00 = y * gx + x
                v01 = v00 + 1
                v10 = v00 + gx
                v11 = v10 + 1
                faces.append((v00, v10, v01))
                faces.append((v01, v10, v11))
        self.face_upsampled = np.asarray(faces, np.int32)
        # right hand = first 3 grid columns, left hand = last 3 grid columns
        col = np.arange(self.vertex_num_upsampled) % gx
        self.rhand_vertex_mask = col < 3
        self.lhand_vertex_mask = col >= gx - 3


smpl_x = _SMPLX()


def _neutral_mesh_vertices():
    gy, gx = smpl_x.grid
    ys, xs = np.meshgrid(np.arange(gy, dtype=np.float32),
                         np.arange(gx, dtype=np.float32), indexing="ij")
    zs = 0.25 * np.sin(0.7 * xs) * np.cos(0.5 * ys)
    return np.stack([xs, ys, zs], axis=-1).reshape(-1, 3).astype(np.float32)


# ----------------------------------------------------------------------------
# Glue: neutral-pose vertex normals (mirrors pytorch3d Meshes.verts_normals_packed,
# which the module computes under torch.no_grad()).  Pure preprocessing.
# TODO(synk): face cross-product scatter-add has no clean Pallas mapping; done in plain JAX.
# ----------------------------------------------------------------------------
def _vertex_normals(verts, faces):
    v0 = verts[faces[:, 0]]
    v1 = verts[faces[:, 1]]
    v2 = verts[faces[:, 2]]
    face_n = jnp.cross(v2 - v1, v0 - v1)
    vn = jnp.zeros_like(verts)
    vn = vn.at[faces[:, 0]].add(face_n)
    vn = vn.at[faces[:, 1]].add(face_n)
    vn = vn.at[faces[:, 2]].add(face_n)
    norm = jnp.linalg.norm(vn, axis=1, keepdims=True)
    return vn / jnp.maximum(norm, 1e-6)


# ----------------------------------------------------------------------------
# Pallas kernel: per (batch, hand-vertex)  relu( dot(normal, offset) / max(||offset||, eps) )
# ----------------------------------------------------------------------------
_EPS = 1e-12  # torch.nn.functional.normalize default eps


def _hand_mean_reg_kernel(n_ref, off_ref, out_ref):
    # n_ref:   (3, TH)       hand-vertex normals, xyz-major, vertices on lanes
    # off_ref: (3, TB, TH)   offsets, xyz-major, batch on sublanes, vertices on lanes
    # out_ref: (TB, TH)
    n = n_ref[...]
    off = off_ref[...]
    nx, ny, nz = n[0:1, :], n[1:2, :], n[2:3, :]   # (1, TH): broadcast over batch
    ox, oy, oz = off[0], off[1], off[2]            # (TB, TH)
    sq = ox * ox + oy * oy + oz * oz
    denom = jnp.maximum(jnp.sqrt(sq), _EPS)        # F.normalize(p=2, dim=2) denominator
    dot = ox * nx + oy * ny + oz * nz
    out_ref[...] = jnp.maximum(dot / denom, 0.0)


def _round_up(x, m):
    return ((x + m - 1) // m) * m


def hand_mean_reg(mesh_neutral_pose, offset, is_rhand, is_lhand, faces):
    """HandMeanReg forward.

    mesh_neutral_pose: (V, 3) f32;  offset: (B, V, 3) f32
    is_rhand / is_lhand: (V,) boolean vertex masks (static -> output shape)
    faces: (F, 3) int32
    Returns: (B, H) f32 with H = number of hand vertices.
    """
    offset = jnp.asarray(offset, jnp.float32)
    B = int(offset.shape[0])

    # --- no_grad()-equivalent preprocessing: neutral-mesh vertex normals.
    normal = _vertex_normals(jnp.asarray(mesh_neutral_pose, jnp.float32),
                             jnp.asarray(faces, jnp.int32))           # (V, 3)

    # --- static hand-vertex selection (boolean-mask indexing needs static shapes).
    is_hand = np.asarray(is_rhand, bool) | np.asarray(is_lhand, bool)
    hand_idx = jnp.asarray(np.nonzero(is_hand)[0].astype(np.int32))
    H = int(hand_idx.shape[0])

    n_hand = jnp.take(normal, hand_idx, axis=0)       # (H, 3)
    off_hand = jnp.take(offset, hand_idx, axis=1)     # (B, H, 3)

    # --- lane-dense layout: vertices -> 128-lane axis, batch -> sublanes,
    #     xyz -> leading size-3 axis (layout plumbing only).
    TH = 512 if H > 512 else _round_up(H, 128)
    TB = 8
    H_pad = _round_up(H, TH)
    B_pad = _round_up(B, TB)

    n_t = jnp.zeros((3, H_pad), jnp.float32).at[:, :H].set(n_hand.T)
    off_t = jnp.zeros((3, B_pad, H_pad), jnp.float32).at[:, :B, :H].set(
        jnp.transpose(off_hand, (2, 0, 1)))

    grid = (B_pad // TB, H_pad // TH)
    out_shape = jax.ShapeDtypeStruct((B_pad, H_pad), jnp.float32)

    if grid == (1, 1):
        # Single tile: no grid / no pipeline machinery; everything sits in VMEM.
        out = pl.pallas_call(
            _hand_mean_reg_kernel,
            out_shape=out_shape,
            in_specs=[pl.BlockSpec(memory_space=pltpu.MemorySpace.VMEM),
                      pl.BlockSpec(memory_space=pltpu.MemorySpace.VMEM)],
            out_specs=pl.BlockSpec(memory_space=pltpu.MemorySpace.VMEM),
        )(n_t, off_t)
    else:
        # Large batch / many hand vertices: tile over (batch, vertex); both axes
        # are independent -> "parallel" (megacore sharding on v7x).
        out = pl.pallas_call(
            _hand_mean_reg_kernel,
            out_shape=out_shape,
            grid_spec=pltpu.PrefetchScalarGridSpec(
                num_scalar_prefetch=0,
                grid=grid,
                in_specs=[
                    pl.BlockSpec((3, TH), lambda b, h: (0, h)),
                    pl.BlockSpec((3, TB, TH), lambda b, h: (0, b, h)),
                ],
                out_specs=pl.BlockSpec((TB, TH), lambda b, h: (b, h)),
            ),
            compiler_params=pltpu.CompilerParams(
                dimension_semantics=("parallel", "parallel")),
        )(n_t, off_t)

    return out[:B, :H]


# ----------------------------------------------------------------------------
# Plain-JAX reference (mirrors the PyTorch forward).
# ----------------------------------------------------------------------------
def _reference(mesh_neutral_pose, offset, is_rhand, is_lhand, faces):
    normal = _vertex_normals(jnp.asarray(mesh_neutral_pose, jnp.float32),
                             jnp.asarray(faces, jnp.int32))
    is_hand = np.asarray(is_rhand, bool) | np.asarray(is_lhand, bool)
    hand_idx = np.nonzero(is_hand)[0]
    norm = jnp.linalg.norm(offset, axis=2, keepdims=True)
    off_n = offset / jnp.maximum(norm, _EPS)
    dot = jnp.sum(normal[None, :, :] * off_n, axis=2)[:, hand_idx]
    return jnp.maximum(dot, 0.0)


if __name__ == "__main__":
    B = 2
    V = smpl_x.vertex_num_upsampled
    mesh_neutral_pose = _neutral_mesh_vertices()                    # (V, 3)
    key = jax.random.PRNGKey(0)
    offset = jax.random.normal(key, (B, V, 3), dtype=jnp.float32)   # (B, V, 3)

    loss = hand_mean_reg(mesh_neutral_pose, offset,
                         smpl_x.rhand_vertex_mask, smpl_x.lhand_vertex_mask,
                         smpl_x.face_upsampled)
    jax.block_until_ready(loss)

    ref = _reference(mesh_neutral_pose, offset,
                     smpl_x.rhand_vertex_mask, smpl_x.lhand_vertex_mask,
                     smpl_x.face_upsampled)
    np.testing.assert_allclose(np.asarray(loss), np.asarray(ref),
                               rtol=1e-5, atol=1e-6)
    print("KERNEL_OK")
</pallas_src>

<mosaic_0001>
module attributes {stable_mosaic.version = 11 : i64} {
  func.func @_hand_mean_reg_kernel(%arg0: memref<3x128xf32, #tpu.memory_space<vmem>>, %arg1: memref<3x8x128xf32, #tpu.memory_space<vmem>>, %arg2: memref<8x128xf32, #tpu.memory_space<vmem>>) attributes {dimension_semantics = [], scalar_prefetch = 0 : i64, scratch_operands = 0 : i64, tpu.core_type = #tpu.core_type<tc>} {
    %c0 = arith.constant 0 : index
    %c0_0 = arith.constant 0 : index
    %0 = vector.load %arg0[%c0, %c0_0] : memref<3x128xf32, #tpu.memory_space<vmem>>, vector<3x128xf32>
    %c0_1 = arith.constant 0 : index
    %c0_2 = arith.constant 0 : index
    %c0_3 = arith.constant 0 : index
    %1 = vector.load %arg1[%c0_1, %c0_2, %c0_3] : memref<3x8x128xf32, #tpu.memory_space<vmem>>, vector<3x8x128xf32>
    %2 = vector.extract_strided_slice %0 {offsets = [0, 0], sizes = [1, 128], strides = [1, 1]} : vector<3x128xf32> to vector<1x128xf32>
    %3 = vector.extract_strided_slice %0 {offsets = [1, 0], sizes = [1, 128], strides = [1, 1]} : vector<3x128xf32> to vector<1x128xf32>
    %4 = vector.extract_strided_slice %0 {offsets = [2, 0], sizes = [1, 128], strides = [1, 1]} : vector<3x128xf32> to vector<1x128xf32>
    %5 = vector.extract_strided_slice %1 {offsets = [0, 0, 0], sizes = [1, 8, 128], strides = [1, 1, 1]} : vector<3x8x128xf32> to vector<1x8x128xf32>
    %6 = vector.shape_cast %5 : vector<1x8x128xf32> to vector<8x128xf32>
    %7 = vector.extract_strided_slice %1 {offsets = [1, 0, 0], sizes = [1, 8, 128], strides = [1, 1, 1]} : vector<3x8x128xf32> to vector<1x8x128xf32>
    %8 = vector.shape_cast %7 : vector<1x8x128xf32> to vector<8x128xf32>
    %9 = vector.extract_strided_slice %1 {offsets = [2, 0, 0], sizes = [1, 8, 128], strides = [1, 1, 1]} : vector<3x8x128xf32> to vector<1x8x128xf32>
    %10 = vector.shape_cast %9 : vector<1x8x128xf32> to vector<8x128xf32>
    %11 = arith.mulf %6, %6 : vector<8x128xf32>
    %12 = arith.mulf %8, %8 : vector<8x128xf32>
    %13 = arith.addf %11, %12 : vector<8x128xf32>
    %14 = arith.mulf %10, %10 : vector<8x128xf32>
    %15 = arith.addf %13, %14 : vector<8x128xf32>
    %16 = math.sqrt %15 : vector<8x128xf32>
    %cst = arith.constant 9.99999996E-13 : f32
    %17 = vector.broadcast %cst : f32 to vector<8x128xf32>
    %18 = arith.maximumf %16, %17 : vector<8x128xf32>
    %19 = vector.broadcast %2 : vector<1x128xf32> to vector<8x128xf32>
    %20 = arith.mulf %6, %19 : vector<8x128xf32>
    %21 = vector.broadcast %3 : vector<1x128xf32> to vector<8x128xf32>
    %22 = arith.mulf %8, %21 : vector<8x128xf32>
    %23 = arith.addf %20, %22 : vector<8x128xf32>
    %24 = vector.broadcast %4 : vector<1x128xf32> to vector<8x128xf32>
    %25 = arith.mulf %10, %24 : vector<8x128xf32>
    %26 = arith.addf %23, %25 : vector<8x128xf32>
    %27 = arith.divf %26, %18 : vector<8x128xf32>
    %cst_4 = arith.constant 0.000000e+00 : f32
    %28 = vector.broadcast %cst_4 : f32 to vector<8x128xf32>
    %29 = arith.maximumf %27, %28 : vector<8x128xf32>
    %c0_5 = arith.constant 0 : index
    %c0_6 = arith.constant 0 : index
    %30 = vector.load %arg2[%c0_5, %c0_6] : memref<8x128xf32, #tpu.memory_space<vmem>>, vector<8x128xf32>
    tpu.vector_store %arg2[%c0_5, %c0_6], %29 {strides = array<i32>} : memref<8x128xf32, #tpu.memory_space<vmem>>, vector<8x128xf32>,
    return
  }
}

</mosaic_0001>

<bundles_post_ra>
// kernel: tpu_custom_call.1
= control target key start
LH: loop header
LB: loop body
LE: loop exit
PB: predicated region body
PF: predicated region fallthrough
CT: control target
= control target key end

     0   :  { %7 = vsyncpa [#allocation3], 0  ;;  %s223_s0 = inlined_call_operand.hbm [shape: f32[3,128], index: 0, kind: input, shape index: {}]   ;;  %s224_s1 = inlined_call_operand.hbm [shape: f32[3,8,128], index: 1, kind: input, shape index: {}]   ;;  %s225_s2 = inlined_call_operand.hbm [shape: f32[8,128], index: 2, kind: output, shape index: {}]  }
   0x1   :  { %8 = vsyncpa [#allocation6], 0 }
   0x2   :  { %9 = vsyncpa [#allocation4], 0  ;;  %s15_s11 = sshll.u32 %s223_s0, 4  ;;  %s194_s12 = smov [#allocation2]   ;;  %s16_s11 = int_to_ptr.hbm [resolvable:$true] %s15_s11 }
   0x3   :  { %s17_s13 = sshll.u32 %s194_s12, 4  ;;  %s25_s16 = sshll.u32 %s224_s1, 4  ;;  %s18_s13 = int_to_ptr.vmem [resolvable:$true] %s17_s13  ;;  %s26_s16 = int_to_ptr.hbm [resolvable:$true] %s25_s16 }
   0x4   :  { %20 = dma.hbm_to_vmem [thread:$0]  %s16_s11, 64, %s18_s13, [#allocation3]  }
   0x5   :  { %s195_s17 = smov [#allocation5]   ;;  %s196_s19 = smov 128  }
   0x6   :  { %s27_s18 = sshll.u32 %s195_s17, 4  ;;  %s197_s20 = smov 8   ;;  %s28_s18 = int_to_ptr.vmem [resolvable:$true] %s27_s18 }
   0x7   :  { %33 = dma.hbm_to_vmem [thread:$0]  %s26_s16, 384, %s28_s18, [#allocation6], %s196_s19, %s196_s19, %s197_s20  }
   0x8   :  { %188 = dma.done.wait [#allocation3], 64  }
   0x9   :  { %189 = vsyncadd [#allocation3], 4294967232 }
   0xa   :  { %190 = dma.done.wait [#allocation6], 384  }
   0xb   :  { %191 = vsyncadd [#allocation6], 4294966912  ;;  %v43_v0 = vld [vmem:[#allocation5] sm:$0xff]  ;;  %v44_v1 = vld [vmem:[#allocation5 + $0x8] sm:$0xff]  ;;  %s198_s0 = smov [#allocation7]   ;;  %s96_s23 = sshll.u32 %s225_s2, 4  ;;  %s97_s23 = int_to_ptr.hbm [resolvable:$true] %s96_s23 }
   0xc   :  { %v45_v2 = vld [vmem:[#allocation5 + $0x10] sm:$0xff]  ;;  %v46_v3 = vmul.f32 %v43_v0, %v43_v0  ;;  %v47_v4 = vmul.f32 %v44_v1, %v44_v1  ;;  %v42_v17 = vld [vmem:[#allocation2] sm:$0x7]  ;;  %s94_s1 = sshll.u32 %s198_s0, 4  ;;  %s95_s1 = int_to_ptr.vmem [resolvable:$true] %s94_s1 }
   0xd   :  { %v49_v5 = vmul.f32 %v45_v2, %v45_v2  ;;  %v64_v20 = vperm.slane %v42_v17, 0  ;;  %v66_v21 = vperm.slane %v42_v17, 1  ;;  %v69_v24 = vperm.slane %v42_v17, 2 }
   0xe   :  { %v48_v6 = vadd.f32 %v47_v4, %v46_v3 }
   0xf   :  { %v65_v22 = vmul.f32 %v64_v20, %v43_v0  ;;  %v67_v23 = vmul.f32 %v66_v21, %v44_v1  ;;  %v70_v28 = vmul.f32 %v69_v24, %v45_v2 }
  0x10   :  { %v50_v7 = vadd.f32 %v49_v5, %v48_v6 }
  0x11   :  { %v68_v27 = vadd.f32 %v67_v23, %v65_v22 }
  0x12   :  { %112 = vrsqrt.f32 %v50_v7  ;;  %vm58_vm0 = vcmp.eq.f32.partialorder %v50_v7, inf  ;;  %v61_v14 = vand.u32 2147483648, %v50_v7  ;;  %vm60_vm1 = vcmp.eq.f32.partialorder %v50_v7, 0.0 }
  0x13   :  { %v71_v34 = vadd.f32 %v70_v28, %v68_v27 }
  0x18   :  { %v113_v8 = vpop.eup %112 }
  0x19   :  { %v52_v9 = vmul.f32 %v113_v8, %v50_v7 }
  0x1b   :  { %v53_v10 = vmul.f32 %v113_v8, %v52_v9 }
  0x1d   :  { %v54_v11 = vmul.f32 0.5, %v53_v10 }
  0x1f   :  { %v55_v12 = vsub.f32 1.5, %v54_v11 }
  0x21   :  { %v56_v13 = vmul.f32 %v113_v8, %v55_v12 }
  0x23   :  { %v57_v15 = vmul.f32 %v56_v13, %v50_v7 }
  0x25   :  { %v59_v16 = vsel %vm58_vm0, %v50_v7, %v57_v15 }
  0x26   :  { %v62_v18 = vsel %vm60_vm1, %v61_v14, %v59_v16 }
  0x27   :  { %v63_v19 = vmax.f32 %v62_v18, 1e-12 }
  0x29   :  { %114 = vrcp.f32 %v63_v19  ;;  %v83_v29 = vand.u32 2147483648, %v63_v19  ;;  %vm77_vm2 = vweird.f32 %v63_v19  ;;  %v81_v31 = vand.u32 2147483647, %v63_v19 }
  0x2b   :  { %v84_v33 = vor.u32 1.1754944e-38, %v83_v29  ;;  %vm82_vm5 = vcmp.eq.f32.partialorder %v81_v31, 8.507059e+37 }
  0x2f   :  { %v115_v25 = vpop.eup %114 }
  0x30   :  { %v73_v26 = vmul.f32 %v115_v25, %v63_v19  ;;  %vm78_vm3 = vweird.f32 %v115_v25 }
  0x31   :  { %vm79_vm4 = vmor %vm77_vm2, %vm78_vm3 }
  0x32   :  { %v74_v30 = vsub.f32 1.0, %v73_v26 }
  0x34   :  { %v75_v32 = vmul.f32 %v115_v25, %v74_v30 }
  0x36   :  { %v76_v35 = vadd.f32 %v115_v25, %v75_v32 }
  0x38   :  { %v80_v36 = vsel %vm79_vm4, %v115_v25, %v76_v35 }
  0x39   :  { %v85_v37 = vsel %vm82_vm5, %v84_v33, %v80_v36 }
  0x3a   :  { %v86_v38 = vmul.f32 %v85_v37, %v71_v34 }
  0x3c   :  { %v87_v39 = vmax.f32 %v86_v38, 0.0 }
  0x3e   :  { %88 = vst [vmem:[#allocation7] sm:$0xff] %v87_v39 }
  0x3f   :  { %99 = dma.vmem_to_hbm [thread:$0]  %s95_s1, 128, %s97_s23, [#allocation4]  }
  0x40   :  { %192 = dma.done.wait [#allocation4], 128  }
  0x41   :  { %193 = vsyncadd [#allocation4], 4294967168 }
  0x42   :  { %104 = vsyncpa [#allocation3], 1 }
  0x43   :  { %105 = vsyncpa [#allocation6], 1 }
  0x44   :  { %106 = vsyncpa [#allocation4], 1 }

</bundles_post_ra>
